<compile_context>
chip_gen: v7x
topology: tpu7x:2x2x1
jax: 0.10.0
libtpu: 0.0.40
codegen_flags: <defaults>
</compile_context>

<pallas_src>
import math

import jax
import jax.numpy as jnp
from jax.experimental import pallas as pl
from jax.experimental.pallas import tpu as pltpu


# ----------------------------------------------------------------------------
# Parameter setup (deterministic, mirrors nn.Module.__init__)
# ----------------------------------------------------------------------------
def make_pe_table(d_model: int, max_length: int) -> jnp.ndarray:
    """Sin/cos positional-encoding table of shape (max_length, d_model)."""
    k = jnp.arange(max_length, dtype=jnp.float32)[:, None]                      # (L, 1)
    div_term = jnp.exp(
        jnp.arange(0, d_model, 2, dtype=jnp.float32) * -(math.log(10000.0) / d_model)
    )                                                                            # (D/2,)
    pe = jnp.zeros((max_length, d_model), dtype=jnp.float32)
    pe = pe.at[:, 0::2].set(jnp.sin(k * div_term))
    pe = pe.at[:, 1::2].set(jnp.cos(k * div_term))
    return pe


# ----------------------------------------------------------------------------
# Pallas kernels (2-D lane-dense tiles)
# ----------------------------------------------------------------------------
def _pe_add_kernel(x_ref, pe_ref, o_ref):
    # x_ref: (TR, TC), pe_ref: (1, TC) -> sublane-broadcast add in x.dtype.
    o_ref[...] = (x_ref[...] + pe_ref[...]).astype(o_ref.dtype)


def _pe_add_dropout_kernel(x_ref, pe_ref, mult_ref, o_ref):
    # mult_ref holds 0 or 1/(1-p) in x.dtype (inverted dropout), same tile as x.
    o_ref[...] = ((x_ref[...] + pe_ref[...]) * mult_ref[...]).astype(o_ref.dtype)


# ----------------------------------------------------------------------------
# Tiling helpers
# ----------------------------------------------------------------------------
_X_TILE_BYTES = 2 * 1024 * 1024   # per-operand tile target


def _divisors(n: int):
    small, large = [], []
    i = 1
    while i * i <= n:
        if n % i == 0:
            small.append(i)
            large.append(n // i)
        i += 1
    return sorted(set(small + large))


def _pick_tile(n: int, cap: int, align: int) -> int:
    """Largest divisor of n <= cap, preferring multiples of `align`.
    If n itself fits under the cap, the full extent is used (always legal)."""
    cap = max(1, cap)
    if n <= cap:
        return n
    divs = [d for d in _divisors(n) if d <= cap]
    aligned = [d for d in divs if d % align == 0]
    return max(aligned) if aligned else max(divs)


# ----------------------------------------------------------------------------
# Python wrapper (the "module")
# ----------------------------------------------------------------------------
class PositionalEncodingPallas:
    def __init__(self, d_model: int, dropout: float, max_length: int):
        self.d_model = d_model
        self.p = float(dropout)
        self.max_length = max_length
        self.pe = make_pe_table(d_model, max_length)          # (L, D) float32

    def __call__(self, x: jnp.ndarray, pos: int = -1, seed: int = 0,
                 training: bool = True) -> jnp.ndarray:
        B, S, D = x.shape
        assert D == self.d_model
        dtype = x.dtype
        itemsize = x.dtype.itemsize

        # ---- lane-dense 2-D view + matching PE operand ----------------------
        if pos == -1:
            # PE varies with (seq, d); broadcast only over batch.
            R, C = B, S * D
            pe2 = self.pe[:S, :].astype(dtype).reshape(1, C)          # (1, S*D)
        else:
            assert 0 <= pos < self.max_length
            # Single PE row broadcast over batch * seq.
            R, C = B * S, D
            pe2 = self.pe[pos:pos + 1, :].astype(dtype)               # (1, D)
        x2 = x.reshape(R, C)

        # ---- tile sizes: ~2 MiB / operand, lane dim a multiple of 128 -------
        budget_elems = max(128, _X_TILE_BYTES // itemsize)
        TC = _pick_tile(C, budget_elems, 128)
        TR = _pick_tile(R, max(1, budget_elems // TC), 8)
        grid = (R // TR, C // TC)

        x_spec = pl.BlockSpec((TR, TC), lambda r, c: (r, c))
        pe_spec = pl.BlockSpec((1, TC), lambda r, c: (0, c))
        out_spec = pl.BlockSpec((TR, TC), lambda r, c: (r, c))

        # ---- dropout multiplier (inverted dropout), built in the wrapper ----
        p = self.p if training else 0.0
        if p > 0.0:
            if p >= 1.0:
                mult = jnp.zeros((R, C), dtype=dtype)
            else:
                keep = jax.random.bernoulli(jax.random.PRNGKey(seed), 1.0 - p, (R, C))
                mult = keep.astype(dtype) * jnp.asarray(1.0 / (1.0 - p), dtype=dtype)
            kernel = _pe_add_dropout_kernel
            operands = (x2, pe2, mult)
            in_specs = [x_spec, pe_spec, x_spec]
        else:
            kernel = _pe_add_kernel
            operands = (x2, pe2)
            in_specs = [x_spec, pe_spec]

        out2 = pl.pallas_call(
            kernel,
            out_shape=jax.ShapeDtypeStruct((R, C), dtype),
            grid=grid,
            in_specs=in_specs,
            out_specs=out_spec,
            compiler_params=pltpu.CompilerParams(
                dimension_semantics=("parallel", "parallel"),
                vmem_limit_bytes=32 * 1024 * 1024,
            ),
        )(*operands)
        return out2.reshape(B, S, D)


# ----------------------------------------------------------------------------
# Demo / correctness check
# ----------------------------------------------------------------------------
if __name__ == "__main__":
    B, S, D, L = 2, 8, 32, 16
    key = jax.random.PRNGKey(0)
    x = jax.random.normal(key, (B, S, D), dtype=jnp.float32)

    # --- 1) deterministic check (dropout disabled / eval mode) ---------------
    mod_eval = PositionalEncodingPallas(d_model=D, dropout=0.0, max_length=L)
    out_eval = jax.block_until_ready(mod_eval(x, pos=-1))
    ref_eval = x + mod_eval.pe[None, :S, :]
    assert out_eval.shape == (B, S, D)
    assert jnp.allclose(out_eval, ref_eval, atol=1e-6), "mismatch vs reference (pos=-1)"

    out_pos = jax.block_until_ready(mod_eval(x, pos=3))
    ref_pos = x + mod_eval.pe[None, 3:4, :]
    assert jnp.allclose(out_pos, ref_pos, atol=1e-6), "mismatch vs reference (pos=3)"

    # --- 2) dropout path (stochastic; check scaling/zeroing structure) -------
    mod_train = PositionalEncodingPallas(d_model=D, dropout=0.1, max_length=L)
    out_drop = jax.block_until_ready(mod_train(x, pos=-1, seed=42, training=True))
    base = x + mod_train.pe[None, :S, :]
    scaled = base * (1.0 / (1.0 - 0.1))
    # every output element is either 0 or the scaled (x + pe) value
    ok = jnp.all(
        jnp.isclose(out_drop, 0.0, atol=1e-6)
        | jnp.isclose(out_drop, scaled, atol=1e-5, rtol=1e-5)
    )
    assert bool(ok), "dropout output not of the form {0, (x+pe)/(1-p)}"

    print("KERNEL_OK")
</pallas_src>

<mosaic_0001>
module attributes {stable_mosaic.version = 11 : i64} {
  func.func @_pe_add_kernel(%arg0: i32, %arg1: i32, %arg2: memref<2x256xf32, #tpu.memory_space<vmem>>, %arg3: memref<1x256xf32, #tpu.memory_space<vmem>>, %arg4: memref<2x256xf32, #tpu.memory_space<vmem>>) attributes {dimension_semantics = [#tpu.dimension_semantics<parallel>, #tpu.dimension_semantics<parallel>], iteration_bounds = array<i64: 1, 1>, scalar_prefetch = 0 : i64, scratch_operands = 0 : i64, tpu.core_type = #tpu.core_type<tc>, window_params = [{transform_indices = @transform_0, window_bounds = array<i64: 2, 256>}, {transform_indices = @transform_1, window_bounds = array<i64: 1, 256>}, {transform_indices = @transform_2, window_bounds = array<i64: 2, 256>}]} {
    %c0 = arith.constant 0 : index
    %c0_0 = arith.constant 0 : index
    %0 = vector.load %arg2[%c0, %c0_0] : memref<2x256xf32, #tpu.memory_space<vmem>>, vector<2x256xf32>
    %c0_1 = arith.constant 0 : index
    %c0_2 = arith.constant 0 : index
    %1 = vector.load %arg3[%c0_1, %c0_2] : memref<1x256xf32, #tpu.memory_space<vmem>>, vector<1x256xf32>
    %2 = vector.broadcast %1 : vector<1x256xf32> to vector<2x256xf32>
    %3 = arith.addf %0, %2 : vector<2x256xf32>
    %c0_3 = arith.constant 0 : index
    %c0_4 = arith.constant 0 : index
    %4 = vector.load %arg4[%c0_3, %c0_4] : memref<2x256xf32, #tpu.memory_space<vmem>>, vector<2x256xf32>
    tpu.vector_store %arg4[%c0_3, %c0_4], %3 {strides = array<i32>} : memref<2x256xf32, #tpu.memory_space<vmem>>, vector<2x256xf32>,
    return
  }
  func.func @transform_0(%arg0: i32, %arg1: i32) -> (i32, i32) {
    %c0_i32 = arith.constant 0 : i32
    return %arg0, %arg1 : i32, i32
  }
  func.func @transform_1(%arg0: i32, %arg1: i32) -> (i32, i32) {
    %c0_i32 = arith.constant 0 : i32
    %c0_i32_0 = arith.constant 0 : i32
    return %c0_i32, %arg1 : i32, i32
  }
  func.func @transform_2(%arg0: i32, %arg1: i32) -> (i32, i32) {
    %c0_i32 = arith.constant 0 : i32
    return %arg0, %arg1 : i32, i32
  }
}

</mosaic_0001>

<bundles_post_ra>
// kernel: tpu_custom_call.1
= control target key start
LH: loop header
LB: loop body
LE: loop exit
PB: predicated region body
PF: predicated region fallthrough
CT: control target
= control target key end

     0   :  { %7 = vsyncpa [#allocation3], 0  ;;  %s157_s0 = inlined_call_operand.hbm [shape: f32[2,256], index: 0, kind: input, shape index: {}]   ;;  %s158_s1 = inlined_call_operand.vmem [shape: f32[1,256], index: 1, kind: input, shape index: {}]   ;;  %s159_s2 = inlined_call_operand.hbm [shape: f32[2,256], index: 2, kind: output, shape index: {}]  }
   0x1   :  { %8 = vsyncpa [#allocation4], 0  ;;  %s112_s9 = smov [#allocation2]   ;;  %s64_s13 = scalar_lea.hbm %s157_s0, 64 }
   0x2   :  { %s15_s10 = sshll.u32 %s112_s9, 4  ;;  %p65_p0 = scmp.ne.s32.totalorder %s157_s0, %s64_s13  ;;  %s16_s10 = int_to_ptr.vmem [resolvable:$true] %s15_s10 }
   0x3   :  { %p68_p1 = scmp.lt.u32.totalorder %s64_s13, %s157_s0 }
   0x5   :  { %p70_p2 = pnand %p68_p1, %p65_p0 }
   0x7   :  { %73 = shalt.err (!%p70_p2)
}
   0x8   :  { %s74_s18 = scalar_lea.vmem %s16_s10, 64  ;;  %p79_p4 = scmp.lt.s32.totalorder %s16_s10, %s16_s10 }
   0x9   :  { %p75_p3 = scmp.ne.s32.totalorder %s16_s10, %s74_s18  ;;  %p80_p5 = scmp.lt.s32.totalorder %s74_s18, %s74_s18 }
   0xb   :  { %p81_p6 = por %p80_p5, %p79_p4 }
   0xd   :  { %p82_p7 = pnand %p81_p6, %p75_p3 }
   0xf   :  { %85 = shalt.err (!%p82_p7)
}
  0x10   :  { %18 = dma.hbm_to_vmem [thread:$0]  %s157_s0, 64, %s16_s10, [#allocation3]  }
  0x11   :  { %108 = dma.done.wait [#allocation3], 64  }
  0x12   :  { %109 = vsyncadd [#allocation3], 4294967232  ;;  %v27_v0 = vlaneseq  ;;  %v113_v1 = vmov 1983009808   ;;  %v25_v7 = vld [vmem:[%s158_s1] sm:$0x3] }
  0x13   :  { %v37_v2 = vunpack.c.l.s4 %v113_v1  ;;  %v24_v12 = vld [vmem:[#allocation2] sm:$0xf]  ;;  %s114_s23 = smov [#allocation5]  }
  0x14   :  { %v28_v3 = vshrl.u32 %v27_v0, 7  ;;  %s52_s0 = sshll.u32 %s114_s23, 4  ;;  %s53_s0 = int_to_ptr.vmem [resolvable:$true] %s52_s0 }
  0x15   :  { %v38_v6 = vunpack.c.0.s8 %v37_v2  ;;  %s86_s24 = scalar_lea.vmem %s53_s0, 64  ;;  %p91_p9 = scmp.lt.s32.totalorder %s53_s0, %s53_s0 }
  0x16   :  { %v29_v4 = vsub.s32 0, %v28_v3  ;;  %v33_v5 = vsub.s32 1, %v28_v3  ;;  %p87_p8 = scmp.ne.s32.totalorder %s53_s0, %s86_s24  ;;  %p92_p10 = scmp.lt.s32.totalorder %s86_s24, %s86_s24 }
  0x17   :  { %v41_v10 = vsub.s32 %v38_v6, %v28_v3 }
  0x18   :  { %v30_v8 = vrot.slane %v25_v7, %v29_v4  ;;  %v34_v9 = vrot.slane %v25_v7, %v33_v5  ;;  %p93_p11 = por %p92_p10, %p91_p9 }
  0x1a   :  { %v35_v11 = vcombine.low %v30_v8, %v34_v9  ;;  %p94_p12 = pnand %p93_p11, %p87_p8 }
  0x1c   :  { %v42_v13 = vrot.slane %v35_v11, %v41_v10 }
  0x1e   :  { %v44_v14 = vadd.f32 %v42_v13, %v24_v12 }
  0x20   :  { %45 = vst [vmem:[#allocation5] sm:$0xf] %v44_v14 }
  0x21   :  { %97 = shalt.err (!%p94_p12)
}
  0x22   :  { %s98_s26 = scalar_lea.hbm %s159_s2, 64 }
  0x23   :  { %p99_p13 = scmp.ne.s32.totalorder %s159_s2, %s98_s26  ;;  %p102_p0 = scmp.lt.u32.totalorder %s98_s26, %s159_s2 }
  0x25   :  { %p104_p1 = pnand %p102_p0, %p99_p13 }
  0x27   :  { %107 = shalt.err (!%p104_p1)
}
  0x28   :  { %55 = dma.vmem_to_hbm [thread:$0]  %s53_s0, 64, %s159_s2, [#allocation4]  }
  0x29   :  { %110 = dma.done.wait [#allocation4], 64  }
  0x2a   :  { %111 = vsyncadd [#allocation4], 4294967232 }
  0x2b   :  { %59 = vsyncpa [#allocation3], 1 }
  0x2c   :  { %60 = vsyncpa [#allocation4], 1 }

</bundles_post_ra>
